<compile_context>
chip_gen: v6e
topology: v6e:2x2x1
jax: 0.10.0
libtpu: 0.0.40
codegen_flags: <defaults>
</compile_context>

<pallas_src>
import functools

import jax
import jax.numpy as jnp
from jax.experimental import pallas as pl
from jax.experimental.pallas import tpu as pltpu

EPS = 1e-5
F32 = jnp.float32
VMEM_LIMIT = 32 * 1024 * 1024   # fits the scoped-VMEM budget of v5e/v6e/v7x


def _row_tile(m, target):
    """Largest row tile <= target that divides m and keeps the sublane dim aligned."""
    if m <= target:
        return m
    for t in range(target, 0, -1):
        if m % t == 0 and (t % 8 == 0 or t == m):
            return t
    return m


def _compiler_params():
    return pltpu.CompilerParams(dimension_semantics=("parallel",),
                                vmem_limit_bytes=VMEM_LIMIT)


# ---------------------------------------------------------------------------
# Kernel 1: per-channel sum / sum-of-squares partials (BN1 statistics over x).
# ---------------------------------------------------------------------------
def _stats_kernel(x_ref, sum_ref, sq_ref):
    x = x_ref[...].astype(F32)
    sum_ref[0] = jnp.sum(x, axis=0, keepdims=True)
    sq_ref[0] = jnp.sum(x * x, axis=0, keepdims=True)


def channel_stats(x2d, *, tile_m):
    m, c = x2d.shape
    tm = _row_tile(m, tile_m)
    nt = m // tm
    ssum, ssq = pl.pallas_call(
        _stats_kernel,
        out_shape=(jax.ShapeDtypeStruct((nt, 1, c), F32),
                   jax.ShapeDtypeStruct((nt, 1, c), F32)),
        grid=(nt,),
        in_specs=[pl.BlockSpec((tm, c), lambda i: (i, 0))],
        out_specs=(pl.BlockSpec((1, 1, c), lambda i: (i, 0, 0)),
                   pl.BlockSpec((1, 1, c), lambda i: (i, 0, 0))),
        compiler_params=_compiler_params(),
        cost_estimate=pl.CostEstimate(
            flops=3 * m * c, transcendentals=0,
            bytes_accessed=int(x2d.size * x2d.dtype.itemsize + 2 * nt * c * 4)),
    )(x2d)
    return jnp.sum(ssum, axis=(0, 1)), jnp.sum(ssq, axis=(0, 1))


def _bn_scale_shift(ssum, ssq, count, gamma, beta):
    """Fold batch statistics + affine params into per-channel scale/shift (f32, O(C))."""
    mean = ssum / count
    # E[x^2]-E[x]^2 (biased var, PyTorch training-mode BN). Fine in f32 at these sizes;
    # use compensated/Welford accumulation at very large N*H*W.
    var = jnp.maximum(ssq / count - mean * mean, 0.0)
    scale = gamma.astype(F32) * jax.lax.rsqrt(var + EPS)
    shift = beta.astype(F32) - mean * scale
    return scale.reshape(1, -1), shift.reshape(1, -1)


# ---------------------------------------------------------------------------
# Kernel 2: fused BN+ReLU + 1x1 conv (matmul), also emitting output channel stats.
# ---------------------------------------------------------------------------
def _bn_relu_matmul_kernel(x_ref, scale_ref, shift_ref, w_ref,
                           y_ref, sum_ref, sq_ref, *, compute_dtype):
    x = x_ref[...].astype(F32)
    a = jnp.maximum(x * scale_ref[...] + shift_ref[...], 0.0)
    y = jnp.dot(a.astype(compute_dtype), w_ref[...], preferred_element_type=F32)
    y_out = y.astype(y_ref.dtype)
    y_ref[...] = y_out
    yf = y_out.astype(F32)          # stats of the values actually stored (self-consistent)
    sum_ref[0] = jnp.sum(yf, axis=0, keepdims=True)
    sq_ref[0] = jnp.sum(yf * yf, axis=0, keepdims=True)


def bn_relu_conv1x1(x2d, scale, shift, w, *, out_dtype, tile_m):
    m, cin = x2d.shape
    cout = w.shape[1]
    tm = _row_tile(m, tile_m)
    nt = m // tm
    kern = functools.partial(_bn_relu_matmul_kernel, compute_dtype=w.dtype)
    y, ssum, ssq = pl.pallas_call(
        kern,
        out_shape=(jax.ShapeDtypeStruct((m, cout), out_dtype),
                   jax.ShapeDtypeStruct((nt, 1, cout), F32),
                   jax.ShapeDtypeStruct((nt, 1, cout), F32)),
        grid=(nt,),
        in_specs=[pl.BlockSpec((tm, cin), lambda i: (i, 0)),
                  pl.BlockSpec((1, cin), lambda i: (0, 0)),
                  pl.BlockSpec((1, cin), lambda i: (0, 0)),
                  pl.BlockSpec((cin, cout), lambda i: (0, 0))],
        out_specs=(pl.BlockSpec((tm, cout), lambda i: (i, 0)),
                   pl.BlockSpec((1, 1, cout), lambda i: (i, 0, 0)),
                   pl.BlockSpec((1, 1, cout), lambda i: (i, 0, 0))),
        compiler_params=_compiler_params(),
        cost_estimate=pl.CostEstimate(
            flops=2 * m * cin * cout, transcendentals=0,
            bytes_accessed=int(x2d.size * x2d.dtype.itemsize + w.size * w.dtype.itemsize
                               + m * cout * jnp.dtype(out_dtype).itemsize)),
    )(x2d, scale, shift, w)
    return y, jnp.sum(ssum, axis=(0, 1)), jnp.sum(ssq, axis=(0, 1))


# ---------------------------------------------------------------------------
# Kernel 3: fused BN+ReLU + 3x3/stride conv, per image; in-VMEM halo, no HBM im2col.
# ---------------------------------------------------------------------------
def _bn_relu_conv3x3_kernel(h_ref, scale_ref, shift_ref, w_ref,
                            y_ref, sum_ref, sq_ref, pad_ref,
                            *, stride, compute_dtype):
    _, H, W, C = h_ref.shape
    _, Ho, Wo, Co = y_ref.shape
    scl = scale_ref[...].reshape(1, 1, C)
    sft = shift_ref[...].reshape(1, 1, C)
    a = jnp.maximum(h_ref[0].astype(F32) * scl + sft, 0.0)            # (H, W, C)
    # Stage a zero-padded (pad=1) copy in VMEM scratch -- the halo never touches HBM.
    pad_ref[...] = jnp.zeros_like(pad_ref)
    pad_ref[pl.ds(1, H), pl.ds(1, W), :] = a
    acc = jnp.zeros((Ho * Wo, Co), F32)
    for dy in range(3):                               # 9 shifted 1x1 matmuls, f32 accumulate
        for dx in range(3):
            dh = pl.ds(dy, Ho) if stride == 1 else pl.ds(dy, Ho, stride)
            dw = pl.ds(dx, Wo) if stride == 1 else pl.ds(dx, Wo, stride)
            win = pad_ref[dh, dw, :].reshape(Ho * Wo, C)
            acc = acc + jnp.dot(win.astype(compute_dtype), w_ref[dy, dx],
                                preferred_element_type=F32)
    y_out = acc.astype(y_ref.dtype)
    y_ref[0] = y_out.reshape(Ho, Wo, Co)
    yf = y_out.astype(F32)
    sum_ref[0] = jnp.sum(yf, axis=0, keepdims=True)
    sq_ref[0] = jnp.sum(yf * yf, axis=0, keepdims=True)


def bn_relu_conv3x3(h_nhwc, scale, shift, w_kkio, *, stride, out_dtype):
    n, H, W, C = h_nhwc.shape
    Co = w_kkio.shape[-1]
    Ho = (H - 1) // stride + 1
    Wo = (W - 1) // stride + 1
    kern = functools.partial(_bn_relu_conv3x3_kernel, stride=stride,
                             compute_dtype=w_kkio.dtype)
    y, ssum, ssq = pl.pallas_call(
        kern,
        out_shape=(jax.ShapeDtypeStruct((n, Ho, Wo, Co), out_dtype),
                   jax.ShapeDtypeStruct((n, 1, Co), F32),
                   jax.ShapeDtypeStruct((n, 1, Co), F32)),
        grid=(n,),
        in_specs=[pl.BlockSpec((1, H, W, C), lambda b: (b, 0, 0, 0)),
                  pl.BlockSpec((1, C), lambda b: (0, 0)),
                  pl.BlockSpec((1, C), lambda b: (0, 0)),
                  pl.BlockSpec((3, 3, C, Co), lambda b: (0, 0, 0, 0))],
        out_specs=(pl.BlockSpec((1, Ho, Wo, Co), lambda b: (b, 0, 0, 0)),
                   pl.BlockSpec((1, 1, Co), lambda b: (b, 0, 0)),
                   pl.BlockSpec((1, 1, Co), lambda b: (b, 0, 0))),
        scratch_shapes=[pltpu.VMEM((H + 2, W + 2, C), F32)],
        compiler_params=_compiler_params(),
        cost_estimate=pl.CostEstimate(
            flops=2 * 9 * n * Ho * Wo * C * Co, transcendentals=0,
            bytes_accessed=int(h_nhwc.size * h_nhwc.dtype.itemsize
                               + w_kkio.size * w_kkio.dtype.itemsize
                               + n * Ho * Wo * Co * jnp.dtype(out_dtype).itemsize)),
    )(h_nhwc, scale, shift, w_kkio)
    return y, jnp.sum(ssum, axis=(0, 1)), jnp.sum(ssq, axis=(0, 1))


# ---------------------------------------------------------------------------
# Kernel 4: fused BN3+ReLU+conv3 (1x1) + shortcut (BN1+ReLU [+ strided 1x1 proj]) + add.
# ---------------------------------------------------------------------------
def _conv3_shortcut_add_kernel(*refs, stride, has_proj, compute_dtype):
    if has_proj:
        (x_ref, h2_ref, s1_ref, t1_ref, s3_ref, t3_ref,
         w3_ref, ws_ref, out_ref) = refs
    else:
        (x_ref, h2_ref, s1_ref, t1_ref, s3_ref, t3_ref,
         w3_ref, out_ref) = refs
        ws_ref = None
    _, Ho, Wo, Co = out_ref.shape
    P = h2_ref.shape[3]
    Cin = x_ref.shape[3]

    # Main branch: relu(bn3(h2)) @ W3   (1x1 conv).
    a3 = jnp.maximum(h2_ref[0].astype(F32) * s3_ref[...].reshape(1, 1, P)
                     + t3_ref[...].reshape(1, 1, P), 0.0)
    y3 = jnp.dot(a3.reshape(Ho * Wo, P).astype(compute_dtype), w3_ref[...],
                 preferred_element_type=F32)

    # Shortcut branch: relu(bn1(x)) recomputed here (never materialized in HBM); the
    # stride-s spatial subsample is folded into the read (no XLA gather/slice pass).
    dh = pl.ds(0, Ho) if stride == 1 else pl.ds(0, Ho, stride)
    dw = pl.ds(0, Wo) if stride == 1 else pl.ds(0, Wo, stride)
    xs = x_ref[:, dh, dw, :].astype(F32)                               # (1, Ho, Wo, Cin)
    a1 = jnp.maximum(xs * s1_ref[...].reshape(1, 1, 1, Cin)
                     + t1_ref[...].reshape(1, 1, 1, Cin), 0.0)
    if has_proj:
        sc = jnp.dot(a1.reshape(Ho * Wo, Cin).astype(compute_dtype), ws_ref[...],
                     preferred_element_type=F32)
    else:
        sc = a1.reshape(Ho * Wo, Co)

    out_ref[0] = (y3 + sc).reshape(Ho, Wo, Co).astype(out_ref.dtype)


def conv3_shortcut_add(x_nhwc, h2_nhwc, scale1, shift1, scale3, shift3, w3, ws,
                       *, stride, out_dtype):
    n, H, W, Cin = x_nhwc.shape
    _, Ho, Wo, P = h2_nhwc.shape
    Co = w3.shape[-1]
    has_proj = ws is not None
    if not has_proj:
        assert Cin == Co and stride == 1
    kern = functools.partial(_conv3_shortcut_add_kernel, stride=stride,
                             has_proj=has_proj, compute_dtype=w3.dtype)
    in_specs = [pl.BlockSpec((1, H, W, Cin), lambda b: (b, 0, 0, 0)),
                pl.BlockSpec((1, Ho, Wo, P), lambda b: (b, 0, 0, 0)),
                pl.BlockSpec((1, Cin), lambda b: (0, 0)),
                pl.BlockSpec((1, Cin), lambda b: (0, 0)),
                pl.BlockSpec((1, P), lambda b: (0, 0)),
                pl.BlockSpec((1, P), lambda b: (0, 0)),
                pl.BlockSpec((P, Co), lambda b: (0, 0))]
    args = [x_nhwc, h2_nhwc, scale1, shift1, scale3, shift3, w3]
    flops = 2 * n * Ho * Wo * P * Co
    if has_proj:
        in_specs.append(pl.BlockSpec((Cin, Co), lambda b: (0, 0)))
        args.append(ws)
        flops += 2 * n * Ho * Wo * Cin * Co
    return pl.pallas_call(
        kern,
        out_shape=jax.ShapeDtypeStruct((n, Ho, Wo, Co), out_dtype),
        grid=(n,),
        in_specs=in_specs,
        out_specs=pl.BlockSpec((1, Ho, Wo, Co), lambda b: (b, 0, 0, 0)),
        compiler_params=_compiler_params(),
        cost_estimate=pl.CostEstimate(
            flops=flops, transcendentals=0,
            bytes_accessed=int(x_nhwc.size * x_nhwc.dtype.itemsize
                               + h2_nhwc.size * h2_nhwc.dtype.itemsize
                               + n * Ho * Wo * Co * jnp.dtype(out_dtype).itemsize)),
    )(*args)


# ---------------------------------------------------------------------------
# PreActBottleneck forward (NHWC core + NCHW boundary wrapper).
# ---------------------------------------------------------------------------
def preact_bottleneck_forward_nhwc(x_nhwc, params, stride, *,
                                   compute_dtype=jnp.float32, tile_m=512):
    """NHWC core; a full network would stay channels-last and skip the boundary transposes."""
    n, h, w, cin = x_nhwc.shape
    planes = params["w1"].shape[0]
    cexp = params["w3"].shape[0]
    has_proj = (stride != 1) or (cin != cexp)
    cd = compute_dtype

    # Conv weights repacked for channels-last matmuls, cast to the matmul operand dtype.
    w1 = params["w1"][:, :, 0, 0].T.astype(cd)                         # (Cin, P)
    w2 = jnp.transpose(params["w2"], (2, 3, 1, 0)).astype(cd)          # (3, 3, P, P)
    w3 = params["w3"][:, :, 0, 0].T.astype(cd)                         # (P, 4P)
    ws = params["ws"][:, :, 0, 0].T.astype(cd) if has_proj else None   # (Cin, 4P)

    x = x_nhwc.astype(F32)
    x2d = x.reshape(n * h * w, cin)

    # BN1 statistics (pass 1 over x) -> per-channel scale/shift.
    s1, q1 = channel_stats(x2d, tile_m=tile_m)
    scale1, shift1 = _bn_scale_shift(s1, q1, n * h * w, params["g1"], params["b1"])

    # Fused BN1+ReLU+conv1 (1x1); emits h1 and its channel statistics in the same pass.
    h1_2d, s2, q2 = bn_relu_conv1x1(x2d, scale1, shift1, w1, out_dtype=cd, tile_m=tile_m)
    scale2, shift2 = _bn_scale_shift(s2, q2, n * h * w, params["g2"], params["b2"])
    h1 = h1_2d.reshape(n, h, w, planes)

    # Fused BN2+ReLU+conv2 (3x3, stride, pad=1); in-VMEM halo, statistics fused.
    h2, s3, q3 = bn_relu_conv3x3(h1, scale2, shift2, w2, stride=stride, out_dtype=cd)
    ho, wo = h2.shape[1], h2.shape[2]
    scale3, shift3 = _bn_scale_shift(s3, q3, n * ho * wo, params["g3"], params["b3"])

    # Fused BN3+ReLU+conv3 + shortcut (BN1+ReLU [+ strided 1x1 projection]) + residual add.
    return conv3_shortcut_add(x, h2, scale1, shift1, scale3, shift3, w3, ws,
                              stride=stride, out_dtype=F32)


def preact_bottleneck_forward(x_nchw, params, stride, *,
                              compute_dtype=jnp.float32, tile_m=512):
    """NCHW boundary wrapper matching the PyTorch module interface."""
    x_nhwc = jnp.transpose(x_nchw, (0, 2, 3, 1))
    out = preact_bottleneck_forward_nhwc(x_nhwc, params, stride,
                                         compute_dtype=compute_dtype, tile_m=tile_m)
    return jnp.transpose(out, (0, 3, 1, 2))


# ---------------------------------------------------------------------------
# Pure-JAX reference (mirrors the PyTorch forward exactly) for verification.
# ---------------------------------------------------------------------------
def preact_bottleneck_reference(x, p, stride):
    def conv(v, w, s=1, pad=0):
        return jax.lax.conv_general_dilated(
            v, w, (s, s), [(pad, pad), (pad, pad)],
            dimension_numbers=("NCHW", "OIHW", "NCHW"),
            precision=jax.lax.Precision.HIGHEST)

    def bn(v, g, b):
        mean = v.mean(axis=(0, 2, 3), keepdims=True)
        var = ((v - mean) ** 2).mean(axis=(0, 2, 3), keepdims=True)
        return ((v - mean) / jnp.sqrt(var + EPS) * g.reshape(1, -1, 1, 1)
                + b.reshape(1, -1, 1, 1))

    a1 = jax.nn.relu(bn(x, p["g1"], p["b1"]))
    shortcut = conv(a1, p["ws"], s=stride) if "ws" in p else a1
    out = conv(a1, p["w1"])
    out = conv(jax.nn.relu(bn(out, p["g2"], p["b2"])), p["w2"], s=stride, pad=1)
    out = conv(jax.nn.relu(bn(out, p["g3"], p["b3"])), p["w3"])
    return out + shortcut


def _make_params(key, in_planes, planes, *, with_projection):
    exp = 4 * planes
    ks = jax.random.split(key, 10)
    p = {
        "w1": 0.1 * jax.random.normal(ks[0], (planes, in_planes, 1, 1), F32),
        "w2": 0.1 * jax.random.normal(ks[1], (planes, planes, 3, 3), F32),
        "w3": 0.1 * jax.random.normal(ks[2], (exp, planes, 1, 1), F32),
        "g1": 1.0 + 0.1 * jax.random.normal(ks[3], (in_planes,), F32),
        "b1": 0.1 * jax.random.normal(ks[4], (in_planes,), F32),
        "g2": 1.0 + 0.1 * jax.random.normal(ks[5], (planes,), F32),
        "b2": 0.1 * jax.random.normal(ks[6], (planes,), F32),
        "g3": 1.0 + 0.1 * jax.random.normal(ks[7], (planes,), F32),
        "b3": 0.1 * jax.random.normal(ks[8], (planes,), F32),
    }
    if with_projection:
        p["ws"] = 0.1 * jax.random.normal(ks[9], (exp, in_planes, 1, 1), F32)
    return p
    # TODO(synk): nn.BatchNorm2d running-stats buffer updates (a training-time side effect)
    # are not modeled; only the forward math (batch statistics) is implemented.


if __name__ == "__main__":
    key = jax.random.PRNGKey(0)
    kp1, kx1, kp2, kx2 = jax.random.split(key, 4)

    # ---- config 1: projection shortcut (stride 2, in_planes != 4*planes) ----
    N, CIN, H, W, PLANES, STRIDE = 2, 8, 16, 16, 4, 2
    EXP = 4 * PLANES
    params = _make_params(kp1, CIN, PLANES, with_projection=True)
    x = jax.random.normal(kx1, (N, CIN, H, W), F32)
    ref = preact_bottleneck_reference(x, params, STRIDE)

    out = jax.block_until_ready(preact_bottleneck_forward(
        x, params, STRIDE, compute_dtype=jnp.float32, tile_m=128))
    assert out.shape == (N, EXP, H // STRIDE, W // STRIDE), out.shape
    err = float(jnp.max(jnp.abs(out - ref)))
    assert jnp.allclose(out, ref, atol=2e-2, rtol=2e-2), f"f32 mismatch, max|d|={err}"

    # bf16 data path (intermediates + matmul operands bf16; f32 accumulation & BN math).
    out_bf16 = jax.block_until_ready(preact_bottleneck_forward(
        x, params, STRIDE, compute_dtype=jnp.bfloat16, tile_m=128))
    err_bf = float(jnp.max(jnp.abs(out_bf16 - ref)))
    assert jnp.allclose(out_bf16, ref, atol=1e-1, rtol=1e-1), f"bf16 mismatch, max|d|={err_bf}"

    # ---- config 2: identity shortcut (stride 1, in_planes == 4*planes) ----
    N2, CIN2, H2, W2, PLANES2, STRIDE2 = 2, 16, 8, 8, 4, 1
    params2 = _make_params(kp2, CIN2, PLANES2, with_projection=False)
    x2 = jax.random.normal(kx2, (N2, CIN2, H2, W2), F32)
    ref2 = preact_bottleneck_reference(x2, params2, STRIDE2)
    out2 = jax.block_until_ready(preact_bottleneck_forward(
        x2, params2, STRIDE2, compute_dtype=jnp.float32, tile_m=128))
    err2 = float(jnp.max(jnp.abs(out2 - ref2)))
    assert jnp.allclose(out2, ref2, atol=2e-2, rtol=2e-2), f"identity mismatch, max|d|={err2}"

    print("KERNEL_OK")
</pallas_src>

<mosaic_0001>
module attributes {stable_mosaic.version = 11 : i64} {
  func.func @_stats_kernel(%arg0: i32, %arg1: memref<128x8xf32, #tpu.memory_space<vmem>>, %arg2: memref<1x1x8xf32, #tpu.memory_space<vmem>>, %arg3: memref<1x1x8xf32, #tpu.memory_space<vmem>>) attributes {dimension_semantics = [#tpu.dimension_semantics<parallel>], iteration_bounds = array<i64: 4>, scalar_prefetch = 0 : i64, scratch_operands = 0 : i64, tpu.core_type = #tpu.core_type<tc>, window_params = [{transform_indices = @transform_0, window_bounds = array<i64: 128, 8>}, {transform_indices = @transform_1, window_bounds = array<i64: 1, 1, 8>}, {transform_indices = @transform_2, window_bounds = array<i64: 1, 1, 8>}]} {
    %c0 = arith.constant 0 : index
    %c0_0 = arith.constant 0 : index
    %0 = vector.load %arg1[%c0, %c0_0] : memref<128x8xf32, #tpu.memory_space<vmem>>, vector<128x8xf32>
    %cst = arith.constant dense<0.000000e+00> : vector<8xf32>
    %1 = vector.multi_reduction <add>, %0, %cst [0] : vector<128x8xf32> to vector<8xf32>
    %2 = vector.shape_cast %1 : vector<8xf32> to vector<1x8xf32>
    %c0_1 = arith.constant 0 : index
    %c0_2 = arith.constant 0 : index
    %c0_3 = arith.constant 0 : index
    %3 = vector.load %arg2[%c0_1, %c0_2, %c0_3] : memref<1x1x8xf32, #tpu.memory_space<vmem>>, vector<1x1x8xf32>
    %4 = vector.shape_cast %3 : vector<1x1x8xf32> to vector<1x8xf32>
    %5 = vector.shape_cast %2 : vector<1x8xf32> to vector<1x1x8xf32>
    tpu.vector_store %arg2[%c0_1, %c0_2, %c0_3], %5 {strides = array<i32>} : memref<1x1x8xf32, #tpu.memory_space<vmem>>, vector<1x1x8xf32>,
    %6 = arith.mulf %0, %0 : vector<128x8xf32>
    %cst_4 = arith.constant dense<0.000000e+00> : vector<8xf32>
    %7 = vector.multi_reduction <add>, %6, %cst_4 [0] : vector<128x8xf32> to vector<8xf32>
    %8 = vector.shape_cast %7 : vector<8xf32> to vector<1x8xf32>
    %c0_5 = arith.constant 0 : index
    %c0_6 = arith.constant 0 : index
    %c0_7 = arith.constant 0 : index
    %9 = vector.load %arg3[%c0_5, %c0_6, %c0_7] : memref<1x1x8xf32, #tpu.memory_space<vmem>>, vector<1x1x8xf32>
    %10 = vector.shape_cast %9 : vector<1x1x8xf32> to vector<1x8xf32>
    %11 = vector.shape_cast %8 : vector<1x8xf32> to vector<1x1x8xf32>
    tpu.vector_store %arg3[%c0_5, %c0_6, %c0_7], %11 {strides = array<i32>} : memref<1x1x8xf32, #tpu.memory_space<vmem>>, vector<1x1x8xf32>,
    return
  }
  func.func @transform_0(%arg0: i32) -> (i32, i32) {
    %c0_i32 = arith.constant 0 : i32
    %c0_i32_0 = arith.constant 0 : i32
    return %arg0, %c0_i32 : i32, i32
  }
  func.func @transform_1(%arg0: i32) -> (i32, i32, i32) {
    %c0_i32 = arith.constant 0 : i32
    %c0_i32_0 = arith.constant 0 : i32
    %c0_i32_1 = arith.constant 0 : i32
    return %arg0, %c0_i32, %c0_i32_0 : i32, i32, i32
  }
  func.func @transform_2(%arg0: i32) -> (i32, i32, i32) {
    %c0_i32 = arith.constant 0 : i32
    %c0_i32_0 = arith.constant 0 : i32
    %c0_i32_1 = arith.constant 0 : i32
    return %arg0, %c0_i32, %c0_i32_0 : i32, i32, i32
  }
}

</mosaic_0001>

<bundles_post_ra>
// kernel: tpu_custom_call.1
= control target key start
LH: loop header
LB: loop body
LE: loop exit
PB: predicated region body
PF: predicated region fallthrough
CT: control target
= control target key end

     0   :  { %8 = vsyncpa [#allocation3], 0  ;;  %s717_s0 = inlined_call_operand.vmem [shape: f32[512,8], index: 0, kind: input, shape index: {}]   ;;  %s718_s1 = inlined_call_operand.hbm [shape: f32[4,1,8], index: 1, kind: output, shape index: {0}]   ;;  %s719_s2 = inlined_call_operand.hbm [shape: f32[4,1,8], index: 2, kind: output, shape index: {1}]  }
   0x1   :  { %10 = vsyncpa [#allocation3 + $0x1], 0 }
   0x2   :  { %11 = vsyncpa [#allocation5], 0 }
   0x3   :  { %13 = vsyncpa [#allocation5 + $0x1], 0  ;;  %s539_s9 = smov 0   ;;  %s541_s10 = smov 0  }
   0x4   :  { %s543_s11 = smov 0   ;;  %s545_s12 = smov 0  }
   0x5 LB: > { %s375_s13 = sadd.s32 4294967295, %s520_s12   ;;  %s376_s14 = sadd.s32 4294967294, %s520_s12   ;;  %s520_s12 = sphi %s545_s12, %s725_s12   ;;  %s516_s11 = sphi %s543_s11, %s724_s11   ;;  %s512_s10 = sphi %s541_s10, %s723_s10   ;;  %s508_s9 = sphi %s539_s9, %s722_s9  }
   0x6   : > { %s562_s15 = sadd.s32 1, %s520_s12   ;;  %s52_s16 = sadd.s32 1, %s516_s11 }
   0x7   : > { %s49_s17 = ssub.s32 %s520_s12, %s562_s15  ;;  %p62_p0 = scmp.ne.s32.totalorder %s516_s11, %s512_s10 }
   0x8   : > { %p50_p1 = scmp.eq.s32.totalorder %s49_s17, 0  ;;  %p63_p2 = scmp.eq.s32.totalorder %s375_s13, 3 }
   0x9   : > { %p68_p3 = scmp.ne.s32.totalorder %s512_s10, %s508_s9  ;;  %p69_p4 = scmp.eq.s32.totalorder %s376_s14, 3 }
   0xa   : > { %s572_s18 = scalar_select %p50_p1, %s516_s11, %s52_s16  }
   0xb   : > { %p574_p5 = por %p63_p2, %p62_p0  ;;  %p578_p6 = por %p69_p4, %p68_p3 }
   0xc   : > { %p379_p7 = scmp.ge.s32.totalorder %s520_s12, 1  ;;  %p122_p8 = scmp.lt.s32.totalorder %s520_s12, 5 }
   0xe   : > { %p123_p9 = pnand %p379_p7, %p122_p8 }
   0xf   : > { %s584_s21 = sshll.u32 (!%p123_p9), %s375_s13, 4  ;;  %s639_s27 = sand.u32 (!%p123_p9), 1, %s512_s10  }
  0x10   : > { %126 = sbr.rel (%p123_p9) target bundleno = 105 (0x69), region = 24  ;;  %p148_p10 = scmp.lt.s32.totalorder (!%p123_p9), %s584_s21, 63 }
  0x11   : > { %s140_s28 = scalar_lea.vmem (!%p123_p9), [#allocation2], %s639_s27  ;;  %s651_s4 = scalar_lea.hbm (!%p123_p9), %s718_s1, %s584_s21 }
  0x12   : > { %s280_s29 = sshll.u32 (!%p123_p9), %s140_s28, 4  ;;  %s264_s5 = scalar_lea.sflag (!%p123_p9), [#allocation3], %s639_s27  ;;  %s645_s29 = int_to_ptr.vmem [resolvable:$true] %s280_s29 }
  0x13   : > { %s430_s6 = scalar_lea.vmem (!%p123_p9), %s645_s29, 16  ;;  %s522_s7 = smov (!%p123_p9), [#allocation2]  }
  0x14   : > { %p431_p11 = scmp.ne.s32.totalorder (!%p123_p9), %s645_s29, %s430_s6  ;;  %s434_s8 = sshll.u32 (!%p123_p9), %s522_s7, 4  ;;  %s435_s8 = int_to_ptr.vmem [resolvable:$false] %s434_s8 }
  0x15   : > { %s149_s22 = scalar_select %p148_p10, %s584_s21, 63  ;;  %vm169_vm0 = vcmask 64512   ;;  %vm207_vm1 = vcmask 57344  }
  0x16   : > { %p432_p12 = pnand %p431_p11, %p574_p5  ;;  %s436_s13 = scalar_lea.vmem %s435_s8, 32 }
  0x17   : > { %s381_s23 = sshll.u32 %s149_s22, 3  ;;  %p437_p0 = scmp.lt.s32.totalorder %s645_s29, %s435_s8 }
  0x18   : > { %s591_s26 = scalar_lea.vmem %s717_s0, %s381_s23  ;;  %p433_p13 = pneg %p432_p12 }
  0x19   : > { %v153_v0 = vld [vmem:[%s591_s26] sm:$0xff]  ;;  %v154_v1 = vld [vmem:[%s591_s26 + $0x8] sm:$0xff]  ;;  %v155_v2 = vld [vmem:[%s591_s26 + $0x10] sm:$0xff]  ;;  %p438_p1 = scmp.lt.s32.totalorder %s436_s13, %s430_s6 }
  0x1a   : > { %v170_v3 = vsel %vm169_vm0, %v153_v0, 0.0  ;;  %v171_v4 = vsel %vm169_vm0, %v154_v1, 0.0  ;;  %v173_v5 = vsel %vm169_vm0, %v155_v2, 0.0  ;;  %v156_v6 = vld [vmem:[%s591_s26 + $0x18] sm:$0xff]  ;;  %v157_v9 = vld [vmem:[%s591_s26 + $0x20] sm:$0xff]  ;;  %v158_v12 = vld [vmem:[%s591_s26 + $0x28] sm:$0xff]  ;;  %v209_v14 = vmul.f32 %v153_v0, %v153_v0 }
  0x1b   : > { %v172_v7 = vadd.f32 %v171_v4, %v170_v3  ;;  %v175_v8 = vsel %vm169_vm0, %v156_v6, 0.0  ;;  %v177_v11 = vsel %vm169_vm0, %v157_v9, 0.0  ;;  %v210_v15 = vmul.f32 %v154_v1, %v154_v1  ;;  %v159_v18 = vld [vmem:[%s591_s26 + $0x30] sm:$0xff]  ;;  %v160_v23 = vld [vmem:[%s591_s26 + $0x38] sm:$0xff]  ;;  %v161_v30 = vld [vmem:[%s591_s26 + $0x40] sm:$0xff]  ;;  %p439_p2 = por %p438_p1, %p437_p0 }
  0x1c   : > { %v211_v16 = vmul.f32 %v155_v2, %v155_v2  ;;  %v179_v17 = vsel %vm169_vm0, %v158_v12, 0.0  ;;  %v212_v20 = vmul.f32 %v156_v6, %v156_v6  ;;  %v181_v21 = vsel %vm169_vm0, %v159_v18, 0.0  ;;  %v162_v36 = vld [vmem:[%s591_s26 + $0x48] sm:$0xff]  ;;  %v163_v42 = vld [vmem:[%s591_s26 + $0x50] sm:$0xff]  ;;  %v164_v48 = vld [vmem:[%s591_s26 + $0x58] sm:$0xff] }
  0x1d   : > { %v174_v10 = vadd.f32 %v173_v5, %v172_v7  ;;  %v213_v22 = vmul.f32 %v157_v9, %v157_v9  ;;  %v225_v25 = vsel %vm169_vm0, %v209_v14, 0.0  ;;  %v226_v26 = vsel %vm169_vm0, %v210_v15, 0.0  ;;  %v165_v54 = vld [vmem:[%s591_s26 + $0x60] sm:$0xff]  ;;  %v166_v60 = vld [vmem:[%s591_s26 + $0x68] sm:$0xff]  ;;  %v167_v2 = vld [vmem:[%s591_s26 + $0x70] sm:$0xff]  ;;  %p440_p3 = pnand %p439_p2, %p433_p13 }
  0x1e   : > { %v228_v27 = vsel %vm169_vm0, %v211_v16, 0.0  ;;  %v183_v28 = vsel %vm169_vm0, %v160_v23, 0.0  ;;  %v227_v29 = vadd.f32 %v226_v26, %v225_v25  ;;  %v214_v32 = vmul.f32 %v158_v12, %v158_v12 }
  0x1f   : > { %v176_v13 = vadd.f32 %v175_v8, %v174_v10  ;;  %v230_v33 = vsel %vm169_vm0, %v212_v20, 0.0  ;;  %v185_v34 = vsel %vm169_vm0, %v161_v30, 0.0  ;;  %v215_v38 = vmul.f32 %v159_v18, %v159_v18  ;;  %v168_v8 = vld [vmem:[%s591_s26 + $0x78] sm:$0xff] }
  0x20   : > { %v229_v35 = vadd.f32 %v228_v27, %v227_v29  ;;  %v232_v39 = vsel %vm169_vm0, %v213_v22, 0.0  ;;  %v187_v40 = vsel %vm169_vm0, %v162_v36, 0.0  ;;  %v216_v44 = vmul.f32 %v160_v23, %v160_v23 }
  0x21   : > { %v178_v19 = vadd.f32 %v177_v11, %v176_v13  ;;  %v234_v45 = vsel %vm169_vm0, %v214_v32, 0.0  ;;  %v189_v46 = vsel %vm169_vm0, %v163_v42, 0.0  ;;  %v217_v50 = vmul.f32 %v161_v30, %v161_v30 }
  0x22   : > { %v231_v41 = vadd.f32 %v230_v33, %v229_v35  ;;  %v236_v51 = vsel %vm169_vm0, %v215_v38, 0.0  ;;  %v191_v52 = vsel %vm169_vm0, %v164_v48, 0.0  ;;  %v218_v56 = vmul.f32 %v162_v36, %v162_v36 }
  0x23   : > { %v180_v24 = vadd.f32 %v179_v17, %v178_v19  ;;  %v238_v57 = vsel %vm169_vm0, %v216_v44, 0.0  ;;  %v193_v58 = vsel %vm169_vm0, %v165_v54, 0.0  ;;  %v219_v62 = vmul.f32 %v163_v42, %v163_v42 }
  0x24   : > { %v233_v47 = vadd.f32 %v232_v39, %v231_v41  ;;  %v240_v63 = vsel %vm169_vm0, %v217_v50, 0.0  ;;  %v195_v0 = vsel %vm169_vm0, %v166_v60, 0.0  ;;  %v220_v4 = vmul.f32 %v164_v48, %v164_v48 }
  0x25   : > { %v182_v31 = vadd.f32 %v181_v21, %v180_v24  ;;  %v242_v5 = vsel %vm169_vm0, %v218_v56, 0.0  ;;  %v197_v6 = vsel %vm169_vm0, %v167_v2, 0.0  ;;  %v221_v10 = vmul.f32 %v165_v54, %v165_v54 }
  0x26   : > { %v235_v53 = vadd.f32 %v234_v45, %v233_v47  ;;  %v244_v11 = vsel %vm169_vm0, %v219_v62, 0.0  ;;  %v199_v12 = vsel %vm169_vm0, %v168_v8, 0.0  ;;  %v222_v15 = vmul.f32 %v166_v60, %v166_v60 }
  0x27   : > { %v184_v37 = vadd.f32 %v183_v28, %v182_v31  ;;  %v246_v16 = vsel %vm169_vm0, %v220_v4, 0.0  ;;  %v223_v19 = vmul.f32 %v167_v2, %v167_v2  ;;  %v248_v20 = vsel %vm169_vm0, %v221_v10, 0.0 }
  0x28   : > { %v237_v59 = vadd.f32 %v236_v51, %v235_v53  ;;  %v224_v23 = vmul.f32 %v168_v8, %v168_v8  ;;  %v250_v24 = vsel %vm169_vm0, %v222_v15, 0.0 }
  0x29   : > { %v186_v43 = vadd.f32 %v185_v34, %v184_v37  ;;  %v252_v27 = vsel %vm169_vm0, %v223_v19, 0.0 }
  0x2a   : > { %v239_v1 = vadd.f32 %v238_v57, %v237_v59  ;;  %v254_v30 = vsel %vm169_vm0, %v224_v23, 0.0 }
  0x2b   : > { %v188_v49 = vadd.f32 %v187_v40, %v186_v43 }
  0x2c   : > { %v241_v7 = vadd.f32 %v240_v63, %v239_v1 }
  0x2d   : > { %v190_v55 = vadd.f32 %v189_v46, %v188_v49 }
  0x2e   : > { %v243_v13 = vadd.f32 %v242_v5, %v241_v7 }
  0x2f   : > { %v192_v61 = vadd.f32 %v191_v52, %v190_v55 }
  0x30   : > { %v245_v17 = vadd.f32 %v244_v11, %v243_v13 }
  0x31   : > { %v194_v3 = vadd.f32 %v193_v58, %v192_v61 }
  0x32   : > { %v247_v21 = vadd.f32 %v246_v16, %v245_v17 }
  0x33   : > { %v196_v9 = vadd.f32 %v195_v0, %v194_v3 }
  0x34   : > { %v249_v25 = vadd.f32 %v248_v20, %v247_v21 }
  0x35   : > { %v198_v14 = vadd.f32 %v197_v6, %v196_v9 }
  0x36   : > { %v251_v28 = vadd.f32 %v250_v24, %v249_v25 }
  0x37   : > { %v200_v18 = vadd.f32 %v199_v12, %v198_v14 }
  0x38   : > { %v253_v31 = vadd.f32 %v252_v27, %v251_v28 }
  0x39   : > { %v201_v22 = vrot.slane %v200_v18, 4 }
  0x3a   : > { %v255_v33 = vadd.f32 %v254_v30, %v253_v31 }
  0x3b   : > { %v202_v26 = vadd.f32 %v201_v22, %v200_v18 }
  0x3c   : > { %v256_v35 = vrot.slane %v255_v33, 4 }
  0x3d   : > { %v203_v29 = vrot.slane %v202_v26, 2 }
  0x3e   : > { %v257_v37 = vadd.f32 %v256_v35, %v255_v33 }
  0x3f   : > { %v204_v32 = vadd.f32 %v203_v29, %v202_v26 }
  0x40   : > { %v258_v38 = vrot.slane %v257_v37, 2 }
  0x41   : > { %v205_v34 = vrot.slane %v204_v32, 1 }
  0x43   : > { %v206_v36 = vadd.f32 %v205_v34, %v204_v32 }
  0x45   : > { %208 = vst.msk [vmem:[%s140_s28] sm:$0x1] %vm207_vm1, %v206_v36 }
  0x46   : > { %443 = shalt.err (!%p440_p3)
}
  0x47   : > { %s444_s14 = scalar_lea.hbm %s651_s4, 16  ;;  %s448_s22 = scalar_lea.hbm %s718_s1, 64 }
  0x48   : > { %p445_p4 = scmp.ne.s32.totalorder %s651_s4, %s444_s14  ;;  %p449_p9 = scmp.lt.s32.totalorder %s651_s4, %s718_s1 }
  0x49   : > { %p450_p10 = scmp.lt.s32.totalorder %s448_s22, %s444_s14 }
  0x4a   : > { %p446_p7 = pnand %p445_p4, %p574_p5 }
  0x4b   : > { %p451_p11 = por %p450_p10, %p449_p9 }
  0x4c   : > { %p447_p8 = pneg %p446_p7 }
  0x4e   : > { %p452_p12 = pnand %p451_p11, %p447_p8 }
  0x50   : > { %455 = shalt.err (!%p452_p12)
}
  0x51   : > { %386 = dma.vmem_to_hbm [thread:$0]  (%p574_p5), %s645_s29, 16, %s651_s4, %s264_s5   ;;  %v259_v39 = vadd.f32 %v258_v38, %v257_v37 }
  0x52   : > { %s146_s25 = scalar_lea.vmem [#allocation4], %s639_s27  ;;  %s291_s3 = scalar_lea.hbm %s719_s2, %s584_s21 }
  0x53   : > { %s293_s26 = sshll.u32 %s146_s25, 4  ;;  %v260_v40 = vrot.slane %v259_v39, 1  ;;  %s268_s6 = scalar_lea.sflag [#allocation5], %s639_s27  ;;  %s676_s26 = int_to_ptr.vmem [resolvable:$true] %s293_s26 }
  0x54   : > { %s456_s7 = scalar_lea.vmem %s676_s26, 16  ;;  %s523_s29 = smov [#allocation4]  }
  0x55   : > { %v261_v41 = vadd.f32 %v260_v40, %v259_v39  ;;  %p457_p13 = scmp.ne.s32.totalorder %s676_s26, %s456_s7  ;;  %s460_s4 = sshll.u32 %s523_s29, 4  ;;  %s461_s4 = int_to_ptr.vmem [resolvable:$false] %s460_s4 }
  0x56   : > { %s462_s5 = scalar_lea.vmem %s461_s4, 32  ;;  %p463_p2 = scmp.lt.s32.totalorder %s676_s26, %s461_s4 }
  0x57   : > { %262 = vst.msk [vmem:[%s146_s25] sm:$0x1] %vm207_vm1, %v261_v41  ;;  %p458_p0 = pnand %p457_p13, %p574_p5  ;;  %p464_p3 = scmp.lt.s32.totalorder %s462_s5, %s456_s7 }
  0x59   : > { %p459_p1 = pneg %p458_p0  ;;  %p465_p4 = por %p464_p3, %p463_p2 }
  0x5b   : > { %p466_p7 = pnand %p465_p4, %p459_p1 }
  0x5d   : > { %469 = shalt.err (!%p466_p7)
}
  0x5e   : > { %s470_s8 = scalar_lea.hbm %s291_s3, 16  ;;  %s474_s13 = scalar_lea.hbm %s719_s2, 64 }
  0x5f   : > { %p471_p8 = scmp.ne.s32.totalorder %s291_s3, %s470_s8  ;;  %p475_p11 = scmp.lt.s32.totalorder %s291_s3, %s719_s2 }
  0x60   : > { %p476_p12 = scmp.lt.s32.totalorder %s474_s13, %s470_s8 }
  0x61   : > { %p472_p9 = pnand %p471_p8, %p574_p5 }
  0x62   : > { %p477_p13 = por %p476_p12, %p475_p11 }
  0x63   : > { %p473_p10 = pneg %p472_p9 }
  0x65   : > { %p478_p0 = pnand %p477_p13, %p473_p10 }
  0x67   : > { %481 = shalt.err (!%p478_p0)
}
  0x68   : > { %387 = dma.vmem_to_hbm [thread:$0]  (%p574_p5), %s676_s26, 16, %s291_s3, %s268_s6  }
  0x69 PF: > { %p397_p1 = scmp.ge.s32.totalorder %s520_s12, 2  ;;  %s305_s17 = sand.u32 1, %s508_s9  }
  0x6a   : > { %s306_s22 = scalar_lea.sflag [#allocation3], %s305_s17 }
  0x6b   : > { %p391_p2 = pnand %p397_p1, %p578_p6 }
  0x6d   : > { %p392_p3 = pneg %p391_p2 }
  0x6f   : > { %499 = dma.done.wait (%p392_p3), %s306_s22, 16  }
  0x70   : > { %501 = vsyncadd (%p392_p3), %s306_s22, 4294967280  ;;  %s314_s23 = scalar_lea.sflag [#allocation5], %s305_s17 }
  0x71   : > { %503 = dma.done.wait (%p392_p3), %s314_s23, 16  }
  0x72   : > { %505 = vsyncadd (%p392_p3), %s314_s23, 4294967280  ;;  %p16_p5 = scmp.ge.s32.totalorder %s562_s15, 6   ;;  %s722_s9 = smov %s512_s10 }
  0x73   : > { %s723_s10 = smov %s516_s11  ;;  %s724_s11 = smov %s572_s18 }
  0x74   : > { %s725_s12 = smov %s562_s15  ;;  %18 = sbr.rel (!%p16_p5) target bundleno = 5 (0x5), region = 76 }
  0x79   :  { %318 = vsyncpa [#allocation3], 1 }
  0x7a   :  { %320 = vsyncpa [#allocation3 + $0x1], 1 }
  0x7b   :  { %321 = vsyncpa [#allocation5], 1 }
  0x7c   :  { %323 = vsyncpa [#allocation5 + $0x1], 1 }

</bundles_post_ra>
